<compile_context>
chip_gen: v5e
topology: v5e:2x2
jax: 0.10.0
libtpu: 0.0.40
codegen_flags: <defaults>
</compile_context>

<pallas_src>
import jax
import jax.numpy as jnp
from jax.experimental import pallas as pl
from jax.experimental.pallas import tpu as pltpu


EPS = 1e-5  # nn.InstanceNorm2d default eps


def _round_up(v, m):
    return ((v + m - 1) // m) * m


def _choose_tk(hw_pad, out2_pad, w_bytes, tk_max, lw_pair_budget_bytes):
    """Largest tk (multiple of 128) that divides hw_pad, is <= tk_max, and keeps the
    double-buffered weight-tile pair (2 * tk * out2_pad * w_bytes) under budget."""
    cap = lw_pair_budget_bytes // (2 * out2_pad * w_bytes)
    target = max(128, min(tk_max, cap, hw_pad))
    target = max(128, (target // 128) * 128)
    m = hw_pad // 128
    for t in range(min(target // 128, m), 0, -1):
        if m % t == 0:
            return t * 128
    return 128


def nblock_kernel(x_ref, cw_ref, lw_ref, acc_ref, stats_ref):
    """One (core-split c, reduction step k) grid point.

    x_ref    : (dim, TK)        f32   input tile, channel-major
    cw_ref   : (dim, 1)         f32   conv1x1 weight (bias cancelled by InstanceNorm)
    lw_ref   : (TK, OUT2P)      bf16  Linear weight tile (pre-transposed, lane-padded)
    acc_ref  : (1, 1, OUT2P)    f32   per-split partial of y @ W  (output-as-accumulator)
    stats_ref: (1, 1, 128)      f32   lane0 = sum(y), lane1 = sum(y*y) partials
    """
    k = pl.program_id(1)

    @pl.when(k == 0)
    def _init():
        acc_ref[...] = jnp.zeros_like(acc_ref)
        stats_ref[...] = jnp.zeros_like(stats_ref)

    # 1x1 conv over channels: f32 VPU multiply + small sublane reduce (MXU stays free).
    x = x_ref[...]                                              # (dim, TK) f32
    y = jnp.sum(x * cw_ref[...], axis=0, keepdims=True)        # (1, TK)  f32

    # Stream bf16 weights from HBM, upcast once in VMEM (exact), accumulate in f32.
    w = lw_ref[...].astype(jnp.float32)                        # (TK, OUT2P)
    acc_ref[...] += jnp.dot(y, w, preferred_element_type=jnp.float32)[None]

    # Single-pass norm statistics (f32).
    s1 = jnp.sum(y)
    s2 = jnp.sum(y * y)
    lane = jax.lax.broadcasted_iota(jnp.int32, stats_ref.shape, 2)
    stats_ref[...] += jnp.where(lane == 0, s1, 0.0) + jnp.where(lane == 1, s2, 0.0)


def prepare_nblock_params(conv_w, lin_w, lin_b, out_feat, hw, *,
                          tk_max=8192, lw_pair_budget_bytes=20 << 20,
                          weight_dtype=jnp.bfloat16, core_split=2):
    """One-time weight packing (do at model init, NOT per forward call).

    conv_w: Conv2d(dim,1,1) weight, any shape reshapable to (dim,)
    lin_w : Linear weight (out_feat^2, n_feat) with n_feat == hw
    lin_b : Linear bias (out_feat^2,)
    """
    out2 = out_feat * out_feat
    cw = jnp.asarray(conv_w, jnp.float32).reshape(-1, 1)        # (dim, 1)
    dim = cw.shape[0]

    hw_pad = _round_up(hw, 128)                                  # lane alignment only
    out2_pad = _round_up(out2, 128)                              # lane-dense output
    w_bytes = jnp.dtype(weight_dtype).itemsize
    tk = _choose_tk(hw_pad, out2_pad, w_bytes, tk_max, lw_pair_budget_bytes)
    steps = hw_pad // tk
    nsplit = core_split if (core_split > 1 and steps % core_split == 0) else 1

    lw_t = jnp.transpose(jnp.asarray(lin_w, jnp.float32))        # (hw, out2), once
    lw_q = lw_t.astype(weight_dtype)                             # quantize once
    # colsum of the SAME (quantized) weight the matmul uses -> fold stays exact.
    cs = jnp.pad(jnp.sum(lw_q.astype(jnp.float32), axis=0), (0, out2_pad - out2))
    lw_q = jnp.pad(lw_q, ((0, hw_pad - hw), (0, out2_pad - out2)))
    lb = jnp.pad(jnp.asarray(lin_b, jnp.float32), (0, out2_pad - out2))

    return dict(cw=cw, lw=lw_q, cs=cs, lb=lb, dim=dim, hw=hw, hw_pad=hw_pad,
                out2=out2, out2_pad=out2_pad, out_feat=out_feat,
                tk=tk, steps=steps, nsplit=nsplit)


def nblock_forward(x_nchw, params):
    """x_nchw: (1, dim, H, W) float32. Returns (1, 1, out_feat, out_feat)."""
    n, dim, h, w = x_nchw.shape
    assert n == 1, "module's final reshape requires batch size 1"
    hw = h * w
    assert hw == params["hw"] and dim == params["dim"]

    hw_pad, out2_pad = params["hw_pad"], params["out2_pad"]
    tk, steps, nsplit = params["tk"], params["steps"], params["nsplit"]
    steps_per_split = steps // nsplit

    x2d = jnp.asarray(x_nchw, jnp.float32).reshape(dim, hw)      # (dim, HW), a view
    if hw_pad != hw:
        # <= 127 zero columns; exact (padded y, y^2, W rows are all zero).
        x2d = jnp.pad(x2d, ((0, 0), (0, hw_pad - hw)))

    lw = params["lw"]
    w_bytes = jnp.dtype(lw.dtype).itemsize

    # Honest VMEM footprint: double-buffered lw + x tiles, resident cw + output blocks,
    # plus ~30% + 1 MiB headroom for Mosaic internal scratch.
    need = (2 * tk * out2_pad * w_bytes            # lw tile pair (bf16)
            + 2 * max(dim, 8) * tk * 4             # x tile pair (f32)
            + 2 * (out2_pad + 128) * 4             # resident output accumulators
            + max(dim, 8) * 128 * 4)               # conv weight + slack
    vmem_limit = min(max(int(need * 1.3) + (1 << 20), 4 << 20), 48 << 20)

    acc_parts, stats_parts = pl.pallas_call(
        nblock_kernel,
        out_shape=(jax.ShapeDtypeStruct((nsplit, 1, out2_pad), jnp.float32),
                   jax.ShapeDtypeStruct((nsplit, 1, 128), jnp.float32)),
        grid_spec=pltpu.PrefetchScalarGridSpec(
            num_scalar_prefetch=0,
            grid=(nsplit, steps_per_split),                      # (core split, HW reduction)
            in_specs=[
                pl.BlockSpec((dim, tk),
                             lambda c, k: (0, c * steps_per_split + k)),   # x tile
                pl.BlockSpec((dim, 1), lambda c, k: (0, 0)),               # conv w (resident)
                pl.BlockSpec((tk, out2_pad),
                             lambda c, k: (c * steps_per_split + k, 0)),   # lw tile (bf16)
            ],
            out_specs=(
                pl.BlockSpec((1, 1, out2_pad), lambda c, k: (c, 0, 0)),    # acc partials
                pl.BlockSpec((1, 1, 128), lambda c, k: (c, 0, 0)),         # stats partials
            ),
        ),
        compiler_params=pltpu.CompilerParams(
            dimension_semantics=("parallel", "arbitrary"),       # split TCs / HW reduction
            vmem_limit_bytes=vmem_limit,
        ),
    )(x2d, params["cw"], lw)

    # Tiny combine + folded-InstanceNorm epilogue (a few hundred floats, plain XLA).
    acc = jnp.sum(acc_parts[:, 0, :], axis=0)                    # (out2_pad,)
    s1 = jnp.sum(stats_parts[:, 0, 0])
    s2 = jnp.sum(stats_parts[:, 0, 1])
    inv_hw = 1.0 / float(hw)
    mean = s1 * inv_hw
    var = jnp.maximum(s2 * inv_hw - mean * mean, 0.0)            # clamp vs cancellation
    inv_std = jax.lax.rsqrt(var + EPS)
    out_row = inv_std * (acc - mean * params["cs"]) + params["lb"]

    out2, out_feat = params["out2"], params["out_feat"]
    return out_row[:out2].reshape(1, 1, out_feat, out_feat)


def nblock_reference(x_nchw, conv_w, conv_b, lin_w, lin_b, out_feat):
    """Plain-JAX reference mirroring the PyTorch forward (keeps the conv bias)."""
    n, dim, h, w = x_nchw.shape
    y = jnp.einsum("ncHW,oc->noHW", x_nchw, conv_w.reshape(1, dim)) \
        + conv_b.reshape(1, 1, 1, 1)
    mean = y.mean(axis=(2, 3), keepdims=True)
    var = ((y - mean) ** 2).mean(axis=(2, 3), keepdims=True)
    y = (y - mean) / jnp.sqrt(var + EPS)
    flat = y.reshape(n, -1)
    out = flat @ lin_w.T + lin_b
    return out.reshape(1, 1, out_feat, out_feat)


if __name__ == "__main__":
    # Small shapes consistent with the module's out_feat < 32 branch (batch must be 1).
    batch, dim, H, W = 1, 4, 16, 16
    out_feat = 8
    n_feat = 1 * H * W                    # channels-after-conv (=1) * H * W = 256
    out2 = out_feat * out_feat

    key = jax.random.PRNGKey(0)
    kx, kcw, klw, klb = jax.random.split(key, 4)

    x = jax.random.normal(kx, (batch, dim, H, W), dtype=jnp.float32)

    # init_type='normal', init_gain=0.02 => weights ~ N(0, 0.02), biases = 0.
    # Nonzero biases anyway to stress the bias-cancellation / bias-add paths.
    conv_w = 0.02 * jax.random.normal(kcw, (1, dim), dtype=jnp.float32)
    conv_b = jnp.full((1,), 0.1, dtype=jnp.float32)              # cancelled by InstanceNorm
    lin_w = 0.02 * jax.random.normal(klw, (out2, n_feat), dtype=jnp.float32)
    lin_b = 0.02 * jax.random.normal(klb, (out2,), dtype=jnp.float32)

    # One-time packing. tk_max=128 so this tiny case exercises a multi-step grid
    # and the 2-way core-split path (hw_pad=256 -> 2 steps of 128 -> nsplit=2).
    params = prepare_nblock_params(conv_w, lin_w, lin_b, out_feat, hw=H * W, tk_max=128)

    out = jax.block_until_ready(nblock_forward(x, params))
    assert out.shape == (1, 1, out_feat, out_feat)

    # Tight check vs a reference using the same bf16-quantized Linear weight,
    # plus a looser check vs the exact-f32 PyTorch-equivalent reference
    # (slack covers bf16 weight storage and TPU matmul precision defaults).
    lw_q = lin_w.astype(jnp.bfloat16).astype(jnp.float32)
    ref_q = nblock_reference(x, conv_w, conv_b, lw_q, lin_b, out_feat)
    ref_f = nblock_reference(x, conv_w, conv_b, lin_w, lin_b, out_feat)

    err_q = float(jnp.max(jnp.abs(out - ref_q)))
    err_f = float(jnp.max(jnp.abs(out - ref_f)))
    assert jnp.allclose(out, ref_q, atol=5e-3, rtol=5e-3), f"max err vs quantized ref {err_q}"
    assert jnp.allclose(out, ref_f, atol=2e-2, rtol=2e-2), f"max err vs f32 ref {err_f}"

    print("KERNEL_OK")
</pallas_src>

<mosaic_0001>
module attributes {stable_mosaic.version = 11 : i64} {
  func.func @nblock_kernel(%arg0: i32, %arg1: i32, %arg2: memref<4x128xf32, #tpu.memory_space<vmem>>, %arg3: memref<4x1xf32, #tpu.memory_space<vmem>>, %arg4: memref<128x128xbf16, #tpu.memory_space<vmem>>, %arg5: memref<1x1x128xf32, #tpu.memory_space<vmem>>, %arg6: memref<1x1x128xf32, #tpu.memory_space<vmem>>) attributes {dimension_semantics = [#tpu.dimension_semantics<parallel>, #tpu.dimension_semantics<arbitrary>], iteration_bounds = array<i64: 2, 1>, scalar_prefetch = 0 : i64, scratch_operands = 0 : i64, tpu.core_type = #tpu.core_type<tc>, window_params = [{transform_indices = @transform_0, window_bounds = array<i64: 4, 128>}, {pipeline_mode = #tpu.pipeline_mode<synchronous>, transform_indices = @transform_1, window_bounds = array<i64: 4, 1>}, {transform_indices = @transform_2, window_bounds = array<i64: 128, 128>}, {transform_indices = @transform_3, window_bounds = array<i64: 1, 1, 128>}, {transform_indices = @transform_4, window_bounds = array<i64: 1, 1, 128>}]} {
    %c0_i32 = arith.constant 0 : i32
    %0 = arith.cmpi eq, %arg1, %c0_i32 : i32
    %1 = arith.extui %0 : i1 to i32
    %c0_i32_0 = arith.constant 0 : i32
    %2 = arith.cmpi ne, %1, %c0_i32_0 : i32
    scf.if %2 {
      %cst_24 = arith.constant 0.000000e+00 : f32
      %40 = vector.broadcast %cst_24 : f32 to vector<1x1x128xf32>
      %c0_25 = arith.constant 0 : index
      %c0_26 = arith.constant 0 : index
      %c0_27 = arith.constant 0 : index
      %41 = vector.load %arg5[%c0_25, %c0_26, %c0_27] : memref<1x1x128xf32, #tpu.memory_space<vmem>>, vector<1x1x128xf32>
      tpu.vector_store %arg5[%c0_25, %c0_26, %c0_27], %40 {strides = array<i32>} : memref<1x1x128xf32, #tpu.memory_space<vmem>>, vector<1x1x128xf32>,
      %cst_28 = arith.constant 0.000000e+00 : f32
      %42 = vector.broadcast %cst_28 : f32 to vector<1x1x128xf32>
      %c0_29 = arith.constant 0 : index
      %c0_30 = arith.constant 0 : index
      %c0_31 = arith.constant 0 : index
      %43 = vector.load %arg6[%c0_29, %c0_30, %c0_31] : memref<1x1x128xf32, #tpu.memory_space<vmem>>, vector<1x1x128xf32>
      tpu.vector_store %arg6[%c0_29, %c0_30, %c0_31], %42 {strides = array<i32>} : memref<1x1x128xf32, #tpu.memory_space<vmem>>, vector<1x1x128xf32>,
    } else {
    }
    %c0 = arith.constant 0 : index
    %c0_1 = arith.constant 0 : index
    %3 = vector.load %arg2[%c0, %c0_1] : memref<4x128xf32, #tpu.memory_space<vmem>>, vector<4x128xf32>
    %c0_2 = arith.constant 0 : index
    %c0_3 = arith.constant 0 : index
    %4 = vector.load %arg3[%c0_2, %c0_3] : memref<4x1xf32, #tpu.memory_space<vmem>>, vector<4x1xf32>
    %5 = vector.broadcast %4 : vector<4x1xf32> to vector<4x128xf32>
    %6 = arith.mulf %3, %5 : vector<4x128xf32>
    %cst = arith.constant dense<0.000000e+00> : vector<128xf32>
    %7 = vector.multi_reduction <add>, %6, %cst [0] : vector<4x128xf32> to vector<128xf32>
    %8 = vector.shape_cast %7 : vector<128xf32> to vector<1x128xf32>
    %c0_4 = arith.constant 0 : index
    %c0_5 = arith.constant 0 : index
    %9 = vector.load %arg4[%c0_4, %c0_5] : memref<128x128xbf16, #tpu.memory_space<vmem>>, vector<128x128xbf16>
    %10 = arith.extf %9 : vector<128x128xbf16> to vector<128x128xf32>
    %c0_6 = arith.constant 0 : index
    %c0_7 = arith.constant 0 : index
    %c0_8 = arith.constant 0 : index
    %11 = vector.load %arg5[%c0_6, %c0_7, %c0_8] : memref<1x1x128xf32, #tpu.memory_space<vmem>>, vector<1x1x128xf32>
    %cst_9 = arith.constant dense<0.000000e+00> : vector<1x128xf32>
    %12 = tpu.matmul %8, %10, %cst_9 {dimension_numbers = #tpu.dot_dimension_numbers<[1], [0], [0], [1], [0, 0, 1, 1], [], []>} : vector<1x128xf32>, vector<128x128xf32>, vector<1x128xf32> -> vector<1x128xf32>
    %13 = vector.shape_cast %12 : vector<1x128xf32> to vector<1x1x128xf32>
    %14 = arith.addf %11, %13 : vector<1x1x128xf32>
    %c0_10 = arith.constant 0 : index
    %c0_11 = arith.constant 0 : index
    %c0_12 = arith.constant 0 : index
    %15 = vector.load %arg5[%c0_10, %c0_11, %c0_12] : memref<1x1x128xf32, #tpu.memory_space<vmem>>, vector<1x1x128xf32>
    tpu.vector_store %arg5[%c0_10, %c0_11, %c0_12], %14 {strides = array<i32>} : memref<1x1x128xf32, #tpu.memory_space<vmem>>, vector<1x1x128xf32>,
    %16 = vector.shape_cast %8 : vector<1x128xf32> to vector<1x1x128xf32>
    %cst_13 = arith.constant dense<0.000000e+00> : vector<1xf32>
    %17 = vector.multi_reduction <add>, %16, %cst_13 [1, 2] : vector<1x1x128xf32> to vector<1xf32>
    %18 = vector.shape_cast %17 : vector<1xf32> to vector<1x1x1xf32>
    %19 = vector.extract %18[0, 0, 0] : f32 from vector<1x1x1xf32>
    %20 = arith.mulf %8, %8 : vector<1x128xf32>
    %21 = vector.shape_cast %20 : vector<1x128xf32> to vector<1x1x128xf32>
    %cst_14 = arith.constant dense<0.000000e+00> : vector<1xf32>
    %22 = vector.multi_reduction <add>, %21, %cst_14 [1, 2] : vector<1x1x128xf32> to vector<1xf32>
    %23 = vector.shape_cast %22 : vector<1xf32> to vector<1x1x1xf32>
    %24 = vector.extract %23[0, 0, 0] : f32 from vector<1x1x1xf32>
    %25 = tpu.iota {dimensions = array<i32: 2>} : vector<1x1x128xi32>
    %c0_15 = arith.constant 0 : index
    %c0_16 = arith.constant 0 : index
    %c0_17 = arith.constant 0 : index
    %26 = vector.load %arg6[%c0_15, %c0_16, %c0_17] : memref<1x1x128xf32, #tpu.memory_space<vmem>>, vector<1x1x128xf32>
    %c0_i32_18 = arith.constant 0 : i32
    %27 = vector.broadcast %c0_i32_18 : i32 to vector<1x1x128xi32>
    %28 = arith.cmpi eq, %25, %27 : vector<1x1x128xi32>
    %cst_19 = arith.constant 0.000000e+00 : f32
    %29 = vector.broadcast %19 : f32 to vector<1x1x128xf32>
    %30 = vector.broadcast %cst_19 : f32 to vector<1x1x128xf32>
    %31 = arith.select %28, %29, %30 : vector<1x1x128xi1>, vector<1x1x128xf32>
    %c1_i32 = arith.constant 1 : i32
    %32 = vector.broadcast %c1_i32 : i32 to vector<1x1x128xi32>
    %33 = arith.cmpi eq, %25, %32 : vector<1x1x128xi32>
    %cst_20 = arith.constant 0.000000e+00 : f32
    %34 = vector.broadcast %24 : f32 to vector<1x1x128xf32>
    %35 = vector.broadcast %cst_20 : f32 to vector<1x1x128xf32>
    %36 = arith.select %33, %34, %35 : vector<1x1x128xi1>, vector<1x1x128xf32>
    %37 = arith.addf %31, %36 : vector<1x1x128xf32>
    %38 = arith.addf %26, %37 : vector<1x1x128xf32>
    %c0_21 = arith.constant 0 : index
    %c0_22 = arith.constant 0 : index
    %c0_23 = arith.constant 0 : index
    %39 = vector.load %arg6[%c0_21, %c0_22, %c0_23] : memref<1x1x128xf32, #tpu.memory_space<vmem>>, vector<1x1x128xf32>
    tpu.vector_store %arg6[%c0_21, %c0_22, %c0_23], %38 {strides = array<i32>} : memref<1x1x128xf32, #tpu.memory_space<vmem>>, vector<1x1x128xf32>,
    return
  }
  func.func @transform_0(%arg0: i32, %arg1: i32) -> (i32, i32) {
    %c1_i32 = arith.constant 1 : i32
    %0 = arith.muli %arg0, %c1_i32 : i32
    %1 = arith.addi %0, %arg1 : i32
    %c0_i32 = arith.constant 0 : i32
    %c0_i32_0 = arith.constant 0 : i32
    return %c0_i32, %1 : i32, i32
  }
  func.func @transform_1(%arg0: i32, %arg1: i32) -> (i32, i32) {
    %c0_i32 = arith.constant 0 : i32
    %c0_i32_0 = arith.constant 0 : i32
    %c0_i32_1 = arith.constant 0 : i32
    return %c0_i32, %c0_i32_0 : i32, i32
  }
  func.func @transform_2(%arg0: i32, %arg1: i32) -> (i32, i32) {
    %c1_i32 = arith.constant 1 : i32
    %0 = arith.muli %arg0, %c1_i32 : i32
    %1 = arith.addi %0, %arg1 : i32
    %c0_i32 = arith.constant 0 : i32
    %c0_i32_0 = arith.constant 0 : i32
    return %1, %c0_i32 : i32, i32
  }
  func.func @transform_3(%arg0: i32, %arg1: i32) -> (i32, i32, i32) {
    %c0_i32 = arith.constant 0 : i32
    %c0_i32_0 = arith.constant 0 : i32
    %c0_i32_1 = arith.constant 0 : i32
    return %arg0, %c0_i32, %c0_i32_0 : i32, i32, i32
  }
  func.func @transform_4(%arg0: i32, %arg1: i32) -> (i32, i32, i32) {
    %c0_i32 = arith.constant 0 : i32
    %c0_i32_0 = arith.constant 0 : i32
    %c0_i32_1 = arith.constant 0 : i32
    return %arg0, %c0_i32, %c0_i32_0 : i32, i32, i32
  }
}

</mosaic_0001>

<bundles_post_ra>
// kernel: tpu_custom_call.1
= control target key start
LH: loop header
LB: loop body
LE: loop exit
PB: predicated region body
PF: predicated region fallthrough
CT: control target
= control target key end

     0   :  { %s1082_s0 = inlined_call_operand.hbm [shape: f32[4,256], index: 0, kind: input, shape index: {}]   ;;  %s1083_s1 = inlined_call_operand.vmem [shape: f32[4,1], index: 1, kind: input, shape index: {}]   ;;  %s1084_s2 = inlined_call_operand.hbm [shape: bf16[256,128], index: 2, kind: input, shape index: {}]   ;;  %s1085_s3 = inlined_call_operand.hbm [shape: f32[2,1,128], index: 3, kind: output, shape index: {0}]   ;;  %s1086_s4 = inlined_call_operand.hbm [shape: f32[2,1,128], index: 4, kind: output, shape index: {1}]  }
   0x1   :  { %1087 = sst [smem:[#allocation14_spill]] %s1082_s0 }
   0x2   :  { %10 = vsyncpa [#allocation3], 0 }
   0x3   :  { %12 = vsyncpa [#allocation3 + $0x1], 0 }
   0x4   :  { %13 = vsyncpa [#allocation6], 0 }
   0x5   :  { %15 = vsyncpa [#allocation6 + $0x1], 0 }
   0x6   :  { %16 = vsyncpa [#allocation4], 0 }
   0x7   :  { %18 = vsyncpa [#allocation4 + $0x1], 0 }
   0x8   :  { %19 = vsyncpa [#allocation9], 0 }
   0x9   :  { %21 = vsyncpa [#allocation9 + $0x1], 0  ;;  %s899_s15 = smov 0   ;;  %s901_s16 = smov 0  }
   0xa   :  { %s903_s17 = smov 0   ;;  %s905_s18 = smov 0  }
   0xb   :  { %s907_s19 = smov 0   ;;  %s909_s20 = smov 0  }
   0xc LB: > { %s555_s21 = sadd.s32 4294967295, %s868_s20   ;;  %s556_s22 = sadd.s32 4294967294, %s868_s20   ;;  %s868_s20 = sphi %s909_s20, %s27_s20   ;;  %s864_s19 = sphi %s907_s19, %s1098_s19   ;;  %s860_s18 = sphi %s905_s18, %s1097_s18   ;;  %s856_s17 = sphi %s903_s17, %s1096_s17   ;;  %s852_s16 = sphi %s901_s16, %s1095_s16   ;;  %s848_s15 = sphi %s899_s15, %s1094_s15  }
   0xd   : > { %s39_s23 = sadd.s32 1, %s864_s19  ;;  %s48_s24 = sadd.s32 1, %s856_s17 }
   0xe   : > { %p41_p0 = scmp.ge.s32.totalorder %s39_s23, 2  ;;  %p55_p1 = scmp.ne.s32.totalorder %s856_s17, %s852_s16 }
   0xf   : > { %p56_p2 = scmp.eq.s32.totalorder %s868_s20, 0  ;;  %p61_p3 = scmp.ne.s32.totalorder %s852_s16, %s848_s15 }
  0x10   : > { %s1100_s23 = smov (%p41_p0, %s39_s23), 0  ;;  %p62_p5 = scmp.eq.s32.totalorder %s555_s21, 0 }
  0x11   : > { %p940_p4 = por %p56_p2, %p55_p1  ;;  %s45_s26 = ssub.s32 %s864_s19, %s1100_s23 }
  0x12   : > { %p134_p6 = scmp.eq.s32.totalorder %s555_s21, 1  ;;  %p46_p7 = scmp.eq.s32.totalorder %s45_s26, 0 }
  0x13   : > { %p946_p8 = por %p62_p5, %p61_p3  ;;  %p140_p10 = scmp.eq.s32.totalorder %s556_s22, 1 }
  0x14   : > { %p950_p9 = por %p134_p6, %p55_p1  ;;  %p558_p12 = scmp.ge.s32.totalorder %s868_s20, 2 }
  0x15   : > { %s955_s29 = scalar_select %p46_p7, %s856_s17, %s48_s24  }
  0x16   : > { %p957_p11 = por %p140_p10, %p61_p3  ;;  %p635_p13 = scmp.lt.s32.totalorder %s868_s20, 2 }
  0x17   : > { %s964_s5 = sand.u32 1, %s856_s17   ;;  %s560_s7 = sshll.u32 %s864_s19, 2 }
  0x18   : > { %s559_s6 = sshll.u32 %s964_s5, 2  ;;  %s1092_s0 = sld [smem:[#allocation14_spill]] }
  0x19   : > { %s193_s11 = scalar_lea.vmem [#allocation2], %s559_s6  ;;  %p973_p0 = pnand %p635_p13, %p940_p4 }
  0x1a   : > { %s202_s12 = sshll.u32 %s193_s11, 4  ;;  %p564_p1 = scmp.ge.s32.totalorder %s868_s20, 1  ;;  %s203_s12 = int_to_ptr.vmem [resolvable:$true] %s202_s12 }
  0x1b   : > { %p230_p2 = scmp.lt.s32.totalorder %s868_s20, 3  ;;  %s190_s21 = scalar_lea.sflag [#allocation3], %s964_s5 }
  0x1c   : > { %s561_s22 = sshll.u32 %s964_s5, 6  ;;  %s569_s24 = sshll.u32 %s864_s19, 6 }
  0x1d   : > { %p231_p3 = pnand %p564_p1, %p230_p2  ;;  %s213_s8 = scalar_lea.vmem [#allocation5], %s561_s22 }
  0x1e   : > { %s198_s10 = scalar_lea.hbm %s1092_s0, %s560_s7  ;;  %s219_s7 = scalar_lea.hbm %s1084_s2, %s569_s24 }
  0x1f   : > { %s200_s13 = sshll.u32 %s198_s10, 4  ;;  %s222_s25 = sshll.u32 %s213_s8, 4  ;;  %s201_s13 = int_to_ptr.hbm [resolvable:$true] %s200_s13  ;;  %s223_s25 = int_to_ptr.vmem [resolvable:$true] %s222_s25 }
  0x20   : > { %624 = dma.hbm_to_vmem [thread:$0]  (!%p973_p0), %s201_s13, 64, %s203_s12, %s190_s21  }
  0x21   : > { %s220_s9 = sshll.u32 %s219_s7, 4  ;;  %s210_s10 = scalar_lea.sflag [#allocation6], %s964_s5  ;;  %s221_s9 = int_to_ptr.hbm [resolvable:$true] %s220_s9 }
  0x22   : > { %s870_s11 = smov 64   ;;  %s871_s0 = smov 4  }
  0x23   : > { %627 = dma.hbm_to_vmem [thread:$0]  (!%p973_p0), %s221_s9, 1024, %s223_s25, %s210_s10, %s870_s11, %s870_s11, %s871_s0  }
  0x24   : > { %234 = sbr.rel (%p231_p3) target bundleno = 367 (0x16f), region = 32  ;;  %s991_s12 = sand.u32 (!%p231_p3), 1, %s852_s16  }
  0x25   : > { %s565_s13 = sshll.u32 (!%p231_p3), %s991_s12, 2  ;;  %s237_s21 = scalar_lea.sflag (!%p231_p3), [#allocation3], %s991_s12 }
  0x26   : > { %s995_s24 = scalar_lea.vmem (!%p231_p3), [#allocation2], %s565_s13 }
  0x29   : > { %831 = dma.done.wait (%p946_p8), %s237_s21, 64  }
  0x2a   : > { %833 = vsyncadd (%p946_p8), %s237_s21, 4294967232  ;;  %s566_s0 = sshll.u32 %s991_s12, 6  ;;  %s247_s5 = scalar_lea.sflag [#allocation6], %s991_s12 }
  0x2b   : > { %s1003_s14 = scalar_lea.vmem [#allocation5], %s566_s0 }
  0x2c   : > { %835 = dma.done.wait (%p946_p8), %s247_s5, 1024  }
  0x2d   : > { %837 = vsyncadd (%p946_p8), %s247_s5, 4294966272  ;;  %v872_v0 = vmov 0   ;;  %v294_v1 = vld [vmem:[%s1083_s1] sm:$0xf]  ;;  %v607_v3 = vld [vmem:[%s1003_s14 + $0x30] sm:$0xff]   ;;  %vm301_vm0 = vcmask 1043456   ;;  %s411_s25 = scalar_lea.hbm %s1085_s3, %s860_s18 }
  0x2e   : > { %689 = vset.pattern.permute.xlu0 %v872_v0  ;;  %v608_v2 = vld [vmem:[%s1003_s14 + $0x38] sm:$0xff]   ;;  %v597_v6 = vunpack.c.h.bf16 %v607_v3  ;;  %v606_v7 = vld [vmem:[%s1003_s14 + $0x28] sm:$0xff]   ;;  %v596_v8 = vunpack.c.l.bf16 %v607_v3  ;;  %v605_v10 = vld [vmem:[%s1003_s14 + $0x20] sm:$0xff]   ;;  %vm364_vm1 = vcmask 1040384   ;;  %s277_s27 = scalar_lea.vmem [#allocation7], %s991_s12  ;;  %v873_v39 = vmov 0.0  }
  0x2f   : > { %297 = vperm.xlu0 %689, %v294_v1   ;;  %v601_v4 = vunpack.c.h.bf16 %v608_v2  ;;  %v600_v5 = vunpack.c.l.bf16 %v608_v2  ;;  %v593_v9 = vunpack.c.h.bf16 %v606_v7  ;;  %v592_v11 = vunpack.c.l.bf16 %v606_v7  ;;  %v604_v14 = vld [vmem:[%s1003_s14 + $0x18] sm:$0xff]   ;;  %v603_v17 = vld [vmem:[%s1003_s14 + $0x10] sm:$0xff]   ;;  %v602_v20 = vld [vmem:[%s1003_s14 + $0x8] sm:$0xff]   ;;  %291 = vst [vmem:[%s277_s27] sm:$0x1] %v873_v39  ;;  %s1023_s6 = scalar_lea.vmem [#allocation8], %s991_s12  ;;  %s413_s9 = sshll.u32 %s277_s27, 4  ;;  %s414_s9 = int_to_ptr.vmem [resolvable:$true] %s413_s9 }
  0x30   : > { %v589_v12 = vunpack.c.h.bf16 %v605_v10  ;;  %v588_v13 = vunpack.c.l.bf16 %v605_v10  ;;  %v585_v15 = vunpack.c.h.bf16 %v604_v14  ;;  %v584_v16 = vunpack.c.l.bf16 %v604_v14  ;;  %v571_v23 = vld [vmem:[%s1003_s14] sm:$0xff]   ;;  %v293_v26 = vld [vmem:[%s995_s24] sm:$0xf]  ;;  %292 = vst [vmem:[%s1023_s6] sm:$0x1] %v873_v39  ;;  %s415_s10 = sshll.u32 %s411_s25, 4  ;;  %s399_s11 = scalar_lea.sflag [#allocation4], %s991_s12  ;;  %s416_s10 = int_to_ptr.hbm [resolvable:$true] %s415_s10 }
  0x31   : > { %342 = vmatpush.msra.mxu0 %v601_v4  ;;  %v581_v18 = vunpack.c.h.bf16 %v603_v17  ;;  %v580_v19 = vunpack.c.l.bf16 %v603_v17  ;;  %v577_v21 = vunpack.c.h.bf16 %v602_v20  ;;  %v576_v22 = vunpack.c.l.bf16 %v602_v20  ;;  %s764_s13 = sshra.s32 %s416_s10, 4  ;;  %s770_s5 = scalar_lea.hbm %s1085_s3, 2  ;;  %s765_s13 = int_to_ptr.hbm [resolvable:$true] %s764_s13 }
  0x32   : > { %v573_v24 = vunpack.c.h.bf16 %v571_v23  ;;  %v572_v25 = vunpack.c.l.bf16 %v571_v23  ;;  %s766_s21 = scalar_lea.hbm %s765_s13, 1  ;;  %p771_p7 = scmp.lt.s32.totalorder %s765_s13, %s1085_s3 }
  0x33   : > { %343 = vmatpush.msra.mxu0 %v600_v5  ;;  %p767_p4 = scmp.ne.s32.totalorder %s765_s13, %s766_s21  ;;  %p772_p8 = scmp.lt.s32.totalorder %s770_s5, %s766_s21 }
  0x35   : > { %344 = vmatpush.msra.mxu0 %v597_v6  ;;  %p768_p5 = pnand %p767_p4, %p950_p9  ;;  %p773_p10 = por %p772_p8, %p771_p7 }
  0x36   : > { %v341_v48 = vld [vmem:[%s277_s27] sm:$0x1] }
  0x37   : > { %345 = vmatpush.msra.mxu0 %v596_v8  ;;  %p769_p6 = pneg %p768_p5 }
  0x39   : > { %346 = vmatpush.msra.mxu0 %v593_v9  ;;  %p774_p13 = pnand %p773_p10, %p769_p6 }
  0x3b   : > { %347 = vmatpush.msra.mxu0 %v592_v11 }
  0x3d   : > { %348 = vmatpush.msra.mxu0 %v589_v12 }
  0x3f   : > { %349 = vmatpush.msra.mxu0 %v588_v13 }
  0x41   : > { %350 = vmatpush.msra.mxu0 %v585_v15 }
  0x43   : > { %351 = vmatpush.msra.mxu0 %v584_v16 }
  0x45   : > { %352 = vmatpush.msra.mxu0 %v581_v18 }
  0x47   : > { %353 = vmatpush.msra.mxu0 %v580_v19 }
  0x49   : > { %354 = vmatpush.msra.mxu0 %v577_v21 }
  0x4b   : > { %355 = vmatpush.msra.mxu0 %v576_v22 }
  0x4d   : > { %356 = vmatpush.msra.mxu0 %v573_v24 }
  0x4f   : > { %357 = vmatpush.msra.mxu0 %v572_v25 }
  0xa1   : > { %v298_v27 = vpop.permute.xlu0 %297 }
  0xa2   : > { %v300_v28 = vmul.f32 %v298_v27, %v293_v26 }
  0xa4   : > { %v302_v29 = vsel %vm301_vm0, %v300_v28, 0.0 }
  0xa5   : > { %v303_v30 = vrot.slane %v302_v29, 4 }
  0xa7   : > { %v304_v31 = vadd.f32 %v303_v30, %v302_v29 }
  0xa9   : > { %v305_v32 = vrot.slane %v304_v31, 2 }
  0xab   : > { %v306_v33 = vadd.f32 %v305_v32, %v304_v31 }
  0xad   : > { %v307_v34 = vrot.slane %v306_v33, 1 }
  0xaf   : > { %v308_v35 = vadd.f32 %v307_v34, %v306_v33 }
  0xb1   : > { %358 = vmatmul.f32.vlgmr.msra.gmra.mxu0 %v308_v35  ;;  %v365_v36 = vsel %vm364_vm1, %v308_v35, 0.0  ;;  %v375_v37 = vmul.f32 %v308_v35, %v308_v35 }
  0xb2   : > { %366 = vadd.xlane.f32.xlu0 %v365_v36 }
  0xb3   : > { %v376_v38 = vsel %vm364_vm1, %v375_v37, 0.0 }
  0xb4   : > { %377 = vadd.xlane.f32.xlu1 %v376_v38 }
 0x125   : > { %v367_v40 = vpop.xlane.xlu0 %366 }
 0x126   : > { %v368_v41 = vrot.slane %v367_v40, 4 }
 0x127   : > { %v378_v42 = vpop.xlane.xlu1 %377 }
 0x128   : > { %v369_v43 = vadd.f32 %v368_v41, %v367_v40  ;;  %v379_v44 = vrot.slane %v378_v42, 4 }
 0x12a   : > { %v370_v45 = vrot.slane %v369_v43, 2  ;;  %v380_v46 = vadd.f32 %v379_v44, %v378_v42 }
 0x12c   : > { %v381_v47 = vrot.slane %v380_v46, 2  ;;  %v371_v49 = vadd.f32 %v370_v45, %v369_v43 }
 0x12e   : > { %v382_v50 = vadd.f32 %v381_v47, %v380_v46  ;;  %v359_v51 = vpop.f32.mrf.mxu0  ;;  %v372_v52 = vrot.slane %v371_v49, 1 }
 0x12f   : > { %v362_v53 = vadd.f32 %v359_v51, %v341_v48 }
 0x130   : > { %v373_v54 = vadd.f32 %v372_v52, %v371_v49  ;;  %v383_v55 = vrot.slane %v382_v50, 1 }
 0x131   : > { %363 = vst [vmem:[%s277_s27] sm:$0x1] %v362_v53 }
 0x132   : > { %609 = vpush %v373_v54  ;;  %v384_v56 = vadd.f32 %v383_v55, %v382_v50 }
 0x133   : > { %777 = shalt.err (!%p774_p13)
}
 0x134   : > { %617 = dma.vmem_to_hbm [thread:$0]  (%p950_p9), %s414_s9, 16, %s416_s10, %s399_s11   ;;  %611 = vpush %v384_v56  ;;  %v386_v57 = vlaneseq  ;;  %v388_v62 = vld [vmem:[%s1023_s6] sm:$0x1] }
 0x135   : > { %s424_s8 = scalar_lea.hbm %s1086_s4, %s860_s18  ;;  %s426_s9 = sshll.u32 %s1023_s6, 4  ;;  %s427_s9 = int_to_ptr.vmem [resolvable:$true] %s426_s9 }
 0x136   : > { %v387_v58 = vand.u32 127, %v386_v57  ;;  %s428_s10 = sshll.u32 %s424_s8, 4  ;;  %s403_s11 = scalar_lea.sflag [#allocation9], %s991_s12  ;;  %s429_s10 = int_to_ptr.hbm [resolvable:$true] %s428_s10 }
 0x137   : > { %s792_s13 = sshra.s32 %s429_s10, 4  ;;  %s798_s0 = scalar_lea.hbm %s1086_s4, 2  ;;  %s793_s13 = int_to_ptr.hbm [resolvable:$true] %s792_s13 }
 0x138   : > { %vm389_vm2 = vcmp.eq.s32.totalorder %v387_v58, 0  ;;  %vm392_vm3 = vcmp.eq.s32.totalorder %v387_v58, 1  ;;  %s794_s21 = scalar_lea.hbm %s793_s13, 1  ;;  %p799_p3 = scmp.lt.s32.totalorder %s793_s13, %s1086_s4 }
 0x139   : > { %p795_p0 = scmp.ne.s32.totalorder %s793_s13, %s794_s21  ;;  %p800_p4 = scmp.lt.s32.totalorder %s798_s0, %s794_s21 }
 0x13b   : > { %p796_p1 = pnand %p795_p0, %p950_p9  ;;  %p801_p5 = por %p800_p4, %p799_p3 }
 0x13d   : > { %p797_p2 = pneg %p796_p1 }
 0x13f   : > { %p802_p6 = pnand %p801_p5, %p797_p2 }
 0x163   : > { %s610_s26 = spop %609 }
 0x164   : > { %v390_v59 = vstv %s610_s26 }
 0x165   : > { %s612_s25 = spop %611  ;;  %v391_v61 = vsel %vm389_vm2, %v390_v59, 0.0 }
 0x166   : > { %v393_v60 = vstv %s612_s25 }
 0x167   : > { %v394_v63 = vsel %vm392_vm3, %v393_v60, 0.0 }
 0x168   : > { %v395_v0 = vadd.f32 %v394_v63, %v391_v61 }
 0x16a   : > { %v396_v1 = vadd.f32 %v395_v0, %v388_v62 }
 0x16c   : > { %397 = vst [vmem:[%s1023_s6] sm:$0x1] %v396_v1 }
 0x16d   : > { %805 = shalt.err (!%p802_p6)
}
 0x16e   : > { %618 = dma.vmem_to_hbm [thread:$0]  (%p950_p9), %s427_s9, 16, %s429_s10, %s403_s11  }
 0x16f PF: > { %s440_s12 = sand.u32 1, %s848_s15   ;;  %p629_p7 = pnand %p558_p12, %p957_p11 }
 0x170   : > { %s441_s6 = scalar_lea.sflag [#allocation4], %s440_s12 }
 0x171   : > { %p630_p8 = pneg %p629_p7 }
 0x173   : > { %839 = dma.done.wait (%p630_p8), %s441_s6, 16  }
 0x174   : > { %841 = vsyncadd (%p630_p8), %s441_s6, 4294967280  ;;  %s450_s22 = scalar_lea.sflag [#allocation9], %s440_s12 }
 0x175   : > { %843 = dma.done.wait (%p630_p8), %s450_s22, 16  }
 0x176   : > { %845 = vsyncadd (%p630_p8), %s450_s22, 4294967280  ;;  %s27_s20 = sadd.s32 1, %s868_s20   ;;  %s1094_s15 = smov %s852_s16 }
 0x177   : > { %p24_p10 = scmp.ge.s32.totalorder %s27_s20, 4   ;;  %s1095_s16 = smov %s856_s17 }
 0x178   : > { %s1096_s17 = smov %s955_s29  ;;  %s1097_s18 = smov %s864_s19 }
 0x179   : > { %s1098_s19 = smov %s1100_s23  ;;  %26 = sbr.rel (!%p24_p10) target bundleno = 12 (0xc), region = 111 }
 0x17e   :  { %455 = vsyncpa [#allocation3], 1 }
 0x17f   :  { %457 = vsyncpa [#allocation3 + $0x1], 1 }
 0x180   :  { %458 = vsyncpa [#allocation6], 1 }
 0x181   :  { %460 = vsyncpa [#allocation6 + $0x1], 1 }
 0x182   :  { %461 = vsyncpa [#allocation4], 1 }
 0x183   :  { %463 = vsyncpa [#allocation4 + $0x1], 1 }
 0x184   :  { %464 = vsyncpa [#allocation9], 1 }
 0x185   :  { %466 = vsyncpa [#allocation9 + $0x1], 1 }

</bundles_post_ra>
